<compile_context>
chip_gen: v7x
topology: tpu7x:2x2x1
jax: 0.10.0
libtpu: 0.0.40
codegen_flags: <defaults>
</compile_context>

<pallas_src>
import functools

import jax
import jax.numpy as jnp
from jax.experimental import pallas as pl
from jax.experimental.pallas import tpu as pltpu


def _get_divisible_by(num, divisor):
    """Mirror of mobile_cv hp.get_divisible_by (round to nearest multiple)."""
    ret = int(num)
    if divisor > 0 and num % divisor != 0:
        ret = int(round(num / divisor) * divisor)
        if ret < divisor:
            ret = divisor
    return ret


def _vmem_capacity_bytes():
    """Physical VMEM per core; conservative 64 MiB (v7x-sized) fallback."""
    try:
        return int(pltpu.get_tpu_info().vmem_capacity_bytes)
    except Exception:
        return 64 << 20


def _pick_tile_hw(hw, max_tile):
    """Spatial (lane) tile: full extent when it fits, otherwise the largest
    multiple-of-128 tile <= max_tile, preferring an exact divisor of hw so no
    tail masking is needed; otherwise cdiv grid + in-kernel mask."""
    if hw <= max_tile:
        return hw
    for t in range(max_tile - max_tile % 128, 127, -128):
        if hw % t == 0:
            return t
    return max_tile


def _pick_batch_pack(n, hw, num_hw_tiles):
    """Images per grid step: pack several when the per-step matmul is tiny,
    but keep >= 2 batch grid steps so megacore can still shard them."""
    if num_hw_tiles != 1 or hw > 512:
        return 1
    best = 1
    for nb in range(1, min(n, 8) + 1):
        if n % nb != 0:
            continue
        if n // nb < min(2, n):
            continue
        if nb * hw > 4096:
            continue
        best = nb
    return best


def irpool_kernel(x_ref, w1_ref, bias_ref, w2_ref, o_ref, acc_ref, *,
                  nb, hw, tile_hw, needs_mask):
    # grid = (batch_step, spatial_tile); the spatial axis is the reduction axis.
    s = pl.program_id(1)

    @pl.when(s == 0)
    def _():
        acc_ref[...] = jnp.zeros_like(acc_ref)

    w1 = w1_ref[...]            # [Cmid, Cin]  (bf16; BN scale pre-folded)
    bias = bias_ref[...]        # [Cmid, 1]    (f32;  BN bias)

    for b in range(nb):         # nb is tiny & static -> fully unrolled
        # pw: 1x1 conv computed transposed so the long spatial axis stays on
        # lanes: [Cmid, Cin] @ [Cin, tile] -> [Cmid, tile] (f32 accumulation).
        y = jnp.dot(w1, x_ref[b], preferred_element_type=jnp.float32)
        y = jnp.maximum(y + bias, 0.0)                      # BN bias + ReLU

        if needs_mask:
            # Tail tile of the cdiv grid: zero padded columns AFTER bias+ReLU.
            valid = hw - s * tile_hw
            lane = jax.lax.broadcasted_iota(jnp.int32, y.shape, 1)
            y = jnp.where(lane < valid, y, 0.0)

        # dw (AdaptiveAvgPool2d(1)): partial spatial SUM as an XLU cross-lane
        # reduce (MXU stays free); the 1/(H*W) factor is folded into w2.
        acc_ref[b] += jnp.sum(y, axis=-1, keepdims=True)    # [Cmid, 1] f32

    @pl.when(s == pl.num_programs(1) - 1)
    def _():
        # pwl: 1x1 conv (no BN) + ReLU on the pooled vector, per image.
        w2 = w2_ref[...].astype(jnp.float32)                # [Cout, Cmid]
        for b in range(nb):
            z = jnp.dot(w2, acc_ref[b], preferred_element_type=jnp.float32)
            o_ref[b] = jnp.maximum(z, 0.0).astype(o_ref.dtype)


def irpool_block(x_nchw, w1, gamma, beta, running_mean, running_var, w2,
                 eps=1e-5, compute_dtype=jnp.bfloat16):
    """IRPoolBlock forward.

    x_nchw : [N, Cin, H, W]   (PyTorch NCHW)
    w1     : [Cmid, Cin]      pw  1x1 conv weight (PyTorch layout, squeezed)
    w2     : [Cout, Cmid]     pwl 1x1 conv weight (PyTorch layout, squeezed)
    gamma/beta/running_mean/running_var : [Cmid]  BN (eval mode) parameters.
    compute_dtype : kernel dtype for x / w1 / w2 (bf16 by default; all matmul
        accumulation and the pooled sum stay f32; output stays x_nchw.dtype).
    returns: [N, Cout, 1, 1]
    """
    N, Cin, H, W = x_nchw.shape
    Cmid, Cin_w = w1.shape
    Cout, Cmid_w = w2.shape
    assert Cin_w == Cin and Cmid_w == Cmid
    HW = H * W

    # Pure reshape (no NCHW->NHWC transpose => no extra HBM pass over x).
    x = x_nchw.reshape(N, Cin, HW).astype(compute_dtype)

    # Fold inference-mode BatchNorm: scale into w1, bias kept separate (f32).
    inv_std = 1.0 / jnp.sqrt(running_var.astype(jnp.float32) + eps)
    scale = gamma.astype(jnp.float32) * inv_std                          # [Cmid]
    w1_folded = (w1.astype(jnp.float32) * scale[:, None]).astype(compute_dtype)
    bias_col = (beta.astype(jnp.float32)
                - running_mean.astype(jnp.float32) * scale)[:, None]     # [Cmid,1]
    # Fold the 1/(H*W) mean factor of the global average pool into pwl weight.
    w2_folded = (w2.astype(jnp.float32) * (1.0 / HW)).astype(compute_dtype)

    # ---- generation-aware tiling / VMEM budgeting --------------------------
    vmem_cap = _vmem_capacity_bytes()
    max_tile = 1024 if vmem_cap <= (64 << 20) else 2048      # v7x vs v5e/v6e
    tile_hw = _pick_tile_hw(HW, max_tile)
    num_hw_tiles = pl.cdiv(HW, tile_hw)
    needs_mask = (HW % tile_hw) != 0
    nb = _pick_batch_pack(N, HW, num_hw_tiles)
    grid_n = N // nb

    itemsize = jnp.dtype(compute_dtype).itemsize
    working = (2 * nb * Cin * tile_hw * itemsize              # double-buffered x
               + nb * Cmid * tile_hw * 4                      # y intermediate (f32)
               + 2 * (Cmid * Cin + Cout * Cmid) * itemsize + 2 * Cmid * 4
               + nb * Cmid * 4                                # pooled-sum scratch
               + 2 * nb * Cout * 4)                           # output block
    vmem_limit = int(min(vmem_cap * 3 // 4,
                         max(2 * working + (2 << 20), 32 << 20)))
    vmem_limit = max(vmem_limit, working + (2 << 20))

    flops = 2 * N * HW * Cin * Cmid + 3 * N * HW * Cmid + 2 * N * Cmid * Cout
    bytes_accessed = (N * Cin * HW * itemsize + Cmid * Cin * itemsize
                      + Cmid * 4 + Cout * Cmid * itemsize + N * Cout * 4)

    kernel = functools.partial(irpool_kernel, nb=nb, hw=HW, tile_hw=tile_hw,
                               needs_mask=needs_mask)

    # TODO(synk): for N == 1 inference on v7x, add a leading "parallel" axis
    # splitting Cmid across the two TensorCores (the pool is per-channel) and
    # apply the tiny pwl matvec on the gathered pooled vector in the wrapper.
    out = pl.pallas_call(
        kernel,
        out_shape=jax.ShapeDtypeStruct((N, Cout, 1), x_nchw.dtype),
        grid_spec=pltpu.PrefetchScalarGridSpec(
            num_scalar_prefetch=0,
            grid=(grid_n, num_hw_tiles),
            in_specs=[
                pl.BlockSpec((nb, Cin, tile_hw), lambda n, s: (n, 0, s)),  # x
                pl.BlockSpec((Cmid, Cin), lambda n, s: (0, 0)),            # w1*scale
                pl.BlockSpec((Cmid, 1), lambda n, s: (0, 0)),              # BN bias
                pl.BlockSpec((Cout, Cmid), lambda n, s: (0, 0)),           # w2/HW
            ],
            out_specs=pl.BlockSpec((nb, Cout, 1), lambda n, s: (n, 0, 0)),
            scratch_shapes=[pltpu.VMEM((nb, Cmid, 1), jnp.float32)],       # pooled sum
        ),
        compiler_params=pltpu.CompilerParams(
            dimension_semantics=("parallel", "arbitrary"),
            vmem_limit_bytes=vmem_limit,
        ),
        cost_estimate=pl.CostEstimate(
            flops=flops, transcendentals=0, bytes_accessed=bytes_accessed),
    )(x, w1_folded, bias_col, w2_folded)

    # res_conn is None (in_channels != out_channels), so no residual add.
    return out.reshape(N, Cout, 1, 1)


def irpool_ref(x_nchw, w1, gamma, beta, running_mean, running_var, w2, eps=1e-5):
    """Plain-JAX f32 reference of the same forward pass (for validation)."""
    N, Cin, H, W = x_nchw.shape
    x = x_nchw.reshape(N, Cin, H * W).astype(jnp.float32)
    y = jnp.einsum("mc,nch->nmh", w1.astype(jnp.float32), x,
                   precision=jax.lax.Precision.HIGHEST)
    scale = gamma / jnp.sqrt(running_var + eps)
    y = y * scale[None, :, None] + (beta - running_mean * scale)[None, :, None]
    y = jnp.maximum(y, 0.0)
    p = jnp.mean(y, axis=-1)                                  # [N, Cmid]
    z = jnp.einsum("om,nm->no", w2.astype(jnp.float32), p,
                   precision=jax.lax.Precision.HIGHEST)
    z = jnp.maximum(z, 0.0)
    return z.reshape(N, -1, 1, 1)


if __name__ == "__main__":
    # Small shapes consistent with the module defaults.
    N, Cin, H, W = 2, 4, 16, 16
    expansion, width_divisor = 6, 8
    Cout = 8                                                  # != Cin => res_conn None
    Cmid = _get_divisible_by(Cin * expansion, width_divisor)  # 24

    key = jax.random.PRNGKey(0)
    kx, k1, k2, kg, kb, km, kv = jax.random.split(key, 7)

    x = jax.random.normal(kx, (N, Cin, H, W), dtype=jnp.float32)
    # pw conv weight: PyTorch [Cmid, Cin, 1, 1] squeezed to [Cmid, Cin].
    w1 = jax.random.normal(k1, (Cmid, Cin), dtype=jnp.float32) * 0.1
    # pwl conv weight: PyTorch [Cout, Cmid, 1, 1] squeezed to [Cout, Cmid].
    w2 = jax.random.normal(k2, (Cout, Cmid), dtype=jnp.float32) * 0.1
    # BatchNorm (eval mode) parameters / running stats.
    gamma = 1.0 + 0.1 * jax.random.normal(kg, (Cmid,), dtype=jnp.float32)
    beta = 0.1 * jax.random.normal(kb, (Cmid,), dtype=jnp.float32)
    running_mean = 0.1 * jax.random.normal(km, (Cmid,), dtype=jnp.float32)
    running_var = jnp.abs(jax.random.normal(kv, (Cmid,), dtype=jnp.float32)) + 0.5

    ref = irpool_ref(x, w1, gamma, beta, running_mean, running_var, w2)

    # Performance-default bf16 compute path (f32 accumulation in-kernel).
    out_bf16 = jax.block_until_ready(
        irpool_block(x, w1, gamma, beta, running_mean, running_var, w2,
                     compute_dtype=jnp.bfloat16))
    assert out_bf16.shape == (N, Cout, 1, 1), out_bf16.shape
    assert jnp.allclose(out_bf16, ref, atol=3e-2, rtol=3e-2), (
        "bf16 path mismatch vs reference: max abs err = %g"
        % float(jnp.max(jnp.abs(out_bf16 - ref))))

    # f32 compute path for a tight numerical check of the kernel structure.
    out_f32 = jax.block_until_ready(
        irpool_block(x, w1, gamma, beta, running_mean, running_var, w2,
                     compute_dtype=jnp.float32))
    assert jnp.allclose(out_f32, ref, atol=1e-4, rtol=1e-4), (
        "f32 path mismatch vs reference: max abs err = %g"
        % float(jnp.max(jnp.abs(out_f32 - ref))))

    print("KERNEL_OK")
</pallas_src>

<mosaic_0001>
module attributes {stable_mosaic.version = 11 : i64} {
  func.func @irpool_kernel(%arg0: i32, %arg1: i32, %arg2: memref<1x4x256xbf16, #tpu.memory_space<vmem>>, %arg3: memref<24x4xbf16, #tpu.memory_space<vmem>>, %arg4: memref<24x1xf32, #tpu.memory_space<vmem>>, %arg5: memref<8x24xbf16, #tpu.memory_space<vmem>>, %arg6: memref<1x8x1xf32, #tpu.memory_space<vmem>>, %arg7: memref<1x24x1xf32, #tpu.memory_space<vmem>>) attributes {dimension_semantics = [#tpu.dimension_semantics<parallel>, #tpu.dimension_semantics<arbitrary>], iteration_bounds = array<i64: 2, 1>, scalar_prefetch = 0 : i64, scratch_operands = 1 : i64, tpu.core_type = #tpu.core_type<tc>, window_params = [{transform_indices = @transform_0, window_bounds = array<i64: 1, 4, 256>}, {pipeline_mode = #tpu.pipeline_mode<synchronous>, transform_indices = @transform_1, window_bounds = array<i64: 24, 4>}, {pipeline_mode = #tpu.pipeline_mode<synchronous>, transform_indices = @transform_2, window_bounds = array<i64: 24, 1>}, {pipeline_mode = #tpu.pipeline_mode<synchronous>, transform_indices = @transform_3, window_bounds = array<i64: 8, 24>}, {transform_indices = @transform_4, window_bounds = array<i64: 1, 8, 1>}]} {
    %c0_i32 = arith.constant 0 : i32
    %0 = arith.cmpi eq, %arg1, %c0_i32 : i32
    %1 = arith.extui %0 : i1 to i32
    %c0_i32_0 = arith.constant 0 : i32
    %2 = arith.cmpi ne, %1, %c0_i32_0 : i32
    scf.if %2 {
      %cst_17 = arith.constant 0.000000e+00 : f32
      %23 = vector.broadcast %cst_17 : f32 to vector<1x24x1xf32>
      %c0_18 = arith.constant 0 : index
      %c0_19 = arith.constant 0 : index
      %c0_20 = arith.constant 0 : index
      %24 = vector.load %arg7[%c0_18, %c0_19, %c0_20] : memref<1x24x1xf32, #tpu.memory_space<vmem>>, vector<1x24x1xf32>
      tpu.vector_store %arg7[%c0_18, %c0_19, %c0_20], %23 {strides = array<i32>} : memref<1x24x1xf32, #tpu.memory_space<vmem>>, vector<1x24x1xf32>,
    } else {
    }
    %c0 = arith.constant 0 : index
    %c0_1 = arith.constant 0 : index
    %3 = vector.load %arg3[%c0, %c0_1] : memref<24x4xbf16, #tpu.memory_space<vmem>>, vector<24x4xbf16>
    %c0_2 = arith.constant 0 : index
    %c0_3 = arith.constant 0 : index
    %4 = vector.load %arg4[%c0_2, %c0_3] : memref<24x1xf32, #tpu.memory_space<vmem>>, vector<24x1xf32>
    %c0_4 = arith.constant 0 : index
    %c0_5 = arith.constant 0 : index
    %c0_6 = arith.constant 0 : index
    %5 = vector.load %arg2[%c0_4, %c0_5, %c0_6] : memref<1x4x256xbf16, #tpu.memory_space<vmem>>, vector<1x4x256xbf16>
    %6 = vector.shape_cast %5 : vector<1x4x256xbf16> to vector<4x256xbf16>
    %cst = arith.constant dense<0.000000e+00> : vector<24x256xf32>
    %7 = tpu.matmul %3, %6, %cst {dimension_numbers = #tpu.dot_dimension_numbers<[1], [0], [0], [1], [0, 0, 1, 1], [], []>} : vector<24x4xbf16>, vector<4x256xbf16>, vector<24x256xf32> -> vector<24x256xf32>
    %8 = vector.broadcast %4 : vector<24x1xf32> to vector<24x256xf32>
    %9 = arith.addf %7, %8 : vector<24x256xf32>
    %cst_7 = arith.constant 0.000000e+00 : f32
    %10 = vector.broadcast %cst_7 : f32 to vector<24x256xf32>
    %11 = arith.maximumf %9, %10 : vector<24x256xf32>
    %c0_8 = arith.constant 0 : index
    %c0_9 = arith.constant 0 : index
    %c0_10 = arith.constant 0 : index
    %12 = vector.load %arg7[%c0_8, %c0_9, %c0_10] : memref<1x24x1xf32, #tpu.memory_space<vmem>>, vector<1x24x1xf32>
    %13 = vector.shape_cast %12 : vector<1x24x1xf32> to vector<24x1xf32>
    %cst_11 = arith.constant dense<0.000000e+00> : vector<24xf32>
    %14 = vector.multi_reduction <add>, %11, %cst_11 [1] : vector<24x256xf32> to vector<24xf32>
    %15 = vector.shape_cast %14 : vector<24xf32> to vector<24x1xf32>
    %16 = arith.addf %13, %15 : vector<24x1xf32>
    %c0_12 = arith.constant 0 : index
    %c0_13 = arith.constant 0 : index
    %c0_14 = arith.constant 0 : index
    %17 = vector.load %arg7[%c0_12, %c0_13, %c0_14] : memref<1x24x1xf32, #tpu.memory_space<vmem>>, vector<1x24x1xf32>
    %18 = vector.shape_cast %17 : vector<1x24x1xf32> to vector<24x1xf32>
    %19 = vector.shape_cast %16 : vector<24x1xf32> to vector<1x24x1xf32>
    tpu.vector_store %arg7[%c0_12, %c0_13, %c0_14], %19 {strides = array<i32>} : memref<1x24x1xf32, #tpu.memory_space<vmem>>, vector<1x24x1xf32>,
    %c0_i32_15 = arith.constant 0 : i32
    %20 = arith.cmpi eq, %arg1, %c0_i32_15 : i32
    %21 = arith.extui %20 : i1 to i32
    %c0_i32_16 = arith.constant 0 : i32
    %22 = arith.cmpi ne, %21, %c0_i32_16 : i32
    scf.if %22 {
      %c0_17 = arith.constant 0 : index
      %c0_18 = arith.constant 0 : index
      %23 = vector.load %arg5[%c0_17, %c0_18] : memref<8x24xbf16, #tpu.memory_space<vmem>>, vector<8x24xbf16>
      %24 = arith.extf %23 : vector<8x24xbf16> to vector<8x24xf32>
      %c0_19 = arith.constant 0 : index
      %c0_20 = arith.constant 0 : index
      %c0_21 = arith.constant 0 : index
      %25 = vector.load %arg7[%c0_19, %c0_20, %c0_21] : memref<1x24x1xf32, #tpu.memory_space<vmem>>, vector<1x24x1xf32>
      %26 = vector.shape_cast %25 : vector<1x24x1xf32> to vector<24x1xf32>
      %cst_22 = arith.constant dense<0.000000e+00> : vector<8x1xf32>
      %27 = tpu.matmul %24, %26, %cst_22 {dimension_numbers = #tpu.dot_dimension_numbers<[1], [0], [0], [1], [0, 0, 1, 1], [], []>} : vector<8x24xf32>, vector<24x1xf32>, vector<8x1xf32> -> vector<8x1xf32>
      %cst_23 = arith.constant 0.000000e+00 : f32
      %28 = vector.broadcast %cst_23 : f32 to vector<8x1xf32>
      %29 = arith.maximumf %27, %28 : vector<8x1xf32>
      %c0_24 = arith.constant 0 : index
      %c0_25 = arith.constant 0 : index
      %c0_26 = arith.constant 0 : index
      %30 = vector.load %arg6[%c0_24, %c0_25, %c0_26] : memref<1x8x1xf32, #tpu.memory_space<vmem>>, vector<1x8x1xf32>
      %31 = vector.shape_cast %30 : vector<1x8x1xf32> to vector<8x1xf32>
      %32 = vector.shape_cast %29 : vector<8x1xf32> to vector<1x8x1xf32>
      tpu.vector_store %arg6[%c0_24, %c0_25, %c0_26], %32 {strides = array<i32>} : memref<1x8x1xf32, #tpu.memory_space<vmem>>, vector<1x8x1xf32>,
    } else {
    }
    return
  }
  func.func @transform_0(%arg0: i32, %arg1: i32) -> (i32, i32, i32) {
    %c0_i32 = arith.constant 0 : i32
    %c0_i32_0 = arith.constant 0 : i32
    return %arg0, %c0_i32, %arg1 : i32, i32, i32
  }
  func.func @transform_1(%arg0: i32, %arg1: i32) -> (i32, i32) {
    %c0_i32 = arith.constant 0 : i32
    %c0_i32_0 = arith.constant 0 : i32
    %c0_i32_1 = arith.constant 0 : i32
    return %c0_i32, %c0_i32_0 : i32, i32
  }
  func.func @transform_2(%arg0: i32, %arg1: i32) -> (i32, i32) {
    %c0_i32 = arith.constant 0 : i32
    %c0_i32_0 = arith.constant 0 : i32
    %c0_i32_1 = arith.constant 0 : i32
    return %c0_i32, %c0_i32_0 : i32, i32
  }
  func.func @transform_3(%arg0: i32, %arg1: i32) -> (i32, i32) {
    %c0_i32 = arith.constant 0 : i32
    %c0_i32_0 = arith.constant 0 : i32
    %c0_i32_1 = arith.constant 0 : i32
    return %c0_i32, %c0_i32_0 : i32, i32
  }
  func.func @transform_4(%arg0: i32, %arg1: i32) -> (i32, i32, i32) {
    %c0_i32 = arith.constant 0 : i32
    %c0_i32_0 = arith.constant 0 : i32
    %c0_i32_1 = arith.constant 0 : i32
    return %arg0, %c0_i32, %c0_i32_0 : i32, i32, i32
  }
}

</mosaic_0001>

<bundles_post_ra>
// kernel: tpu_custom_call.1
= control target key start
LH: loop header
LB: loop body
LE: loop exit
PB: predicated region body
PF: predicated region fallthrough
CT: control target
= control target key end

     0   :  { %s634_s15 = smov 0   ;;  %s636_s16 = smov 0   ;;  %s696_s0 = inlined_call_operand.vmem [shape: bf16[2,4,256], index: 0, kind: input, shape index: {}]   ;;  %s697_s1 = inlined_call_operand.vmem [shape: bf16[24,4], index: 1, kind: input, shape index: {}]   ;;  %s698_s2 = inlined_call_operand.vmem [shape: f32[24,1], index: 2, kind: input, shape index: {}]   ;;  %s699_s3 = inlined_call_operand.vmem [shape: bf16[8,24], index: 3, kind: input, shape index: {}]   ;;  %s700_s4 = inlined_call_operand.vmem [shape: f32[2,8,1], index: 4, kind: output, shape index: {}]  }
   0x1   :  { %s638_s17 = smov 0  }
   0x2 LB: > { %s26_s18 = sadd.s32 1, %s599_s16  ;;  %p517_p0 = scmp.ge.s32.totalorder %s603_s17, 1  ;;  %s603_s17 = sphi %s638_s17, %s14_s17   ;;  %s599_s16 = sphi %s636_s16, %s702_s16   ;;  %s595_s15 = sphi %s634_s15, %s701_s15  }
   0x3   : > { %p28_p1 = scmp.ge.s32.totalorder %s26_s18, 2  ;;  %p181_p2 = scmp.lt.s32.totalorder %s603_s17, 3 }
   0x5   : > { %s704_s18 = smov (%p28_p1, %s26_s18), 0  ;;  %p182_p3 = pnand %p517_p0, %p181_p2 }
   0x6   : > { %p211_p4 = scmp.lt.s32.totalorder (!%p182_p3), %s595_s15, 1  ;;  %v605_v0 = vmov (!%p182_p3), 0   ;;  %v236_v1 = vld [vmem:[%s698_s2] sm:$0xff] (!%p182_p3)  ;;  %v238_v2 = vld [vmem:[%s698_s2 + $0x10] sm:$0xff] (!%p182_p3)  ;;  %vm279_vm0 = vcmask (!%p182_p3), 1041408   ;;  %v237_v3 = vld [vmem:[%s698_s2 + $0x8] sm:$0xff] (!%p182_p3) }
   0x7   : > { %185 = sbr.rel (%p182_p3) target bundleno = 619 (0x26b), region = 36  ;;  %318 = vmatprep.mubr.bf16.mxu0 (!%p182_p3), %v605_v0  ;;  %328 = vmatprep.mubr.bf16.mxu1 (!%p182_p3), %v605_v0  ;;  %v579_v7 = vld [vmem:[%s697_s1] sm:$0xff] (!%p182_p3)   ;;  %v580_v8 = vld [vmem:[%s697_s1 + $0x8] ss:$0 sps:$4 sm:$0xff] (!%p182_p3)   ;;  %vm272_vm1 = vcmask (!%p182_p3), 31744   ;;  %vm229_vm2 = vcmask (!%p182_p3), 7168  }
   0x8   : > { %577 = vset.pattern.permute.xlu0 (!%p182_p3), %v605_v0  ;;  %578 = vset.pattern.permute.xlu1 (!%p182_p3), %v605_v0  ;;  %v606_v9 = vmov (!%p182_p3), 0.0   ;;  %v607_v36 = vmov (!%p182_p3), 0.0|0.0   ;;  %vm608_vm3 = vmmov (!%p182_p3), 0   ;;  %v365_v49 = vld [vmem:[%s699_s3] sm:$0xf] (!%p182_p3)  ;;  %vm370_vm4 = vcmask (!%p182_p3), 195584  }
   0x9   : > { %242 = vperm.xlu0 (!%p182_p3), %577, %v236_v1   ;;  %252 = vperm.xlu1 (!%p182_p3), %578, %v238_v2   ;;  %230 = vst.msk [vmem:[#allocation2] sm:$0xff] (!%p182_p3), %vm229_vm2, %v606_v9  ;;  %231 = vst.msk [vmem:[#allocation2 + $0x8] sm:$0xff] (!%p182_p3), %vm229_vm2, %v606_v9  ;;  %v366_v51 = vunpack.c.l.bf16 (!%p182_p3), %v365_v49 }
   0xa   : > { %232 = vst.msk [vmem:[#allocation2 + $0x10] sm:$0xff] (!%p182_p3), %vm229_vm2, %v606_v9 }
   0xd   : > { %247 = vperm.xlu0 (!%p182_p3), %577, %v237_v3  }
   0xe   : > { %s706_s15 = smov (!%p211_p4, %s595_s15), 1 }
   0xf   : > { %s530_s23 = sshll.u32 %s706_s15, 2  ;;  %s520_s9 = sshll.u32 %s706_s15, 3 }
  0x10   : > { %s218_s28 = scalar_lea.vmem %s696_s0, %s530_s23  ;;  %v343_v37 = vld [vmem:[#allocation2] sm:$0xff]  ;;  %v344_v39 = vld [vmem:[#allocation2 + $0x8] sm:$0xff]  ;;  %s223_s12 = scalar_lea.vmem %s700_s4, %s520_s9 }
  0x11   : > { %v523_v4 = vld.sshfl [vmem:[%s218_s28] sm:$0x33 pattern:$0x76325410]  ;;  %v345_v43 = vld [vmem:[#allocation2 + $0x10] sm:$0xff] }
  0x12   : > { %v271_v5 = vcombine.high %v523_v4, %v523_v4  ;;  %v281_v6 = vsel %vm279_vm0, %v523_v4, 0 }
  0x14   : > { %524 = vmatprep.subr.msk.bf16.mxu0 %vm279_vm0, %v271_v5  ;;  %547 = vmatprep.subr.msk.bf16.mxu1 %vm279_vm0, %v271_v5 }
  0x15   : > { %287 = vmatpush1.bf16.msra.mxu0 %v281_v6  ;;  %548 = vmatpush1.bf16.msra.mxu1 %v281_v6 }
  0x16   : > { %544 = vmatprep.subr.bf16.mxu1 %v607_v36 }
  0x18   : > { %525 = vmatmul.mubr.msk.bf16.vlgmr.msra.gmra.mrb[0].mxu0 %vm272_vm1, %v579_v7  ;;  %526 = vmatmul.mubr.msk.bf16.vlgmr.msra.gmra.mrb[0].mxu1 %vm272_vm1, %v580_v8 }
  0x19   : > { %541 = vmatprep.mubr.msk.f32.mxu1 %vm608_vm3, %v606_v9 }
  0x88   : > { %v243_v10 = vpop.permute.xlu0 %242  ;;  %v253_v11 = vpop.permute.xlu1 %252 }
  0x8c   : > { %v248_v12 = vpop.permute.xlu0 %247 }
  0xeb   : > { %v320_v13 = vpop.f32.mrb[0].mxu0  ;;  %v330_v14 = vpop.f32.mrb[0].mxu1 }
  0xec   : > { %v321_v15 = vadd.f32 %v320_v13, %v243_v10  ;;  %v322_v16 = vpop.f32.mrb[1].mxu0  ;;  %v332_v17 = vpop.f32.mrb[1].mxu1  ;;  %v331_v18 = vadd.f32 %v330_v14, %v253_v11 }
  0xed   : > { %v323_v19 = vadd.f32 %v322_v16, %v243_v10  ;;  %v324_v20 = vpop.f32.mrb[2].mxu0  ;;  %v334_v21 = vpop.f32.mrb[2].mxu1  ;;  %v333_v22 = vadd.f32 %v332_v17, %v253_v11 }
  0xee   : > { %v337_v23 = vmax.f32 %v321_v15, 0.0  ;;  %v325_v24 = vadd.f32 %v324_v20, %v248_v12  ;;  %v326_v25 = vpop.f32.mrb[3].mxu0  ;;  %v341_v26 = vmax.f32 %v331_v18, 0.0  ;;  %v335_v27 = vpop.f32.mrb[3].mxu1 }
  0xef   : > { %v338_v28 = vmax.f32 %v323_v19, 0.0  ;;  %v327_v29 = vadd.f32 %v326_v25, %v248_v12  ;;  %v342_v30 = vmax.f32 %v333_v22, 0.0 }
  0xf0   : > { %v339_v31 = vmax.f32 %v325_v24, 0.0 }
  0xf1   : > { %v340_v32 = vmax.f32 %v327_v29, 0.0  ;;  %v346_v33 = vadd.f32 %v338_v28, %v337_v23  ;;  %v352_v34 = vadd.f32 %v342_v30, %v341_v26 }
  0xf3   : > { %347 = vadd.xlane.f32.xlu1 %v346_v33  ;;  %v349_v35 = vadd.f32 %v340_v32, %v339_v31 }
  0xf5   : > { %350 = vadd.xlane.f32.xlu0 %v349_v35 }
  0xf9   : > { %353 = vadd.xlane.f32.xlu0 %v352_v34 }
 0x180   : > { %v348_v38 = vpop.xlane.xlu1 %347 }
 0x181   : > { %v355_v40 = vadd.f32 %v348_v38, %v343_v37 }
 0x182   : > { %v351_v41 = vpop.xlane.xlu0 %350 }
 0x183   : > { %359 = vst.msk [vmem:[#allocation2] sm:$0xff] %vm229_vm2, %v355_v40  ;;  %v356_v42 = vadd.f32 %v351_v41, %v344_v39 }
 0x185   : > { %360 = vst.msk [vmem:[#allocation2 + $0x8] sm:$0xff] %vm229_vm2, %v356_v42 }
 0x186   : > { %v354_v44 = vpop.xlane.xlu0 %353 }
 0x187   : > { %v357_v45 = vadd.f32 %v354_v44, %v345_v43 }
 0x189   : > { %361 = vst.msk [vmem:[#allocation2 + $0x10] sm:$0xff] %vm229_vm2, %v357_v45 }
 0x18a   : > { %v367_v46 = vld [vmem:[#allocation2] sm:$0xff] }
 0x18c   : > { %v368_v47 = vld [vmem:[#allocation2 + $0x8] sm:$0xff] }
 0x18d   : > { %v545_v48 = vpack.c.bf16 %v368_v47, %v367_v46 }
 0x18f   : > { %546 = vmatpush3.bf16.msra.mxu1 %v545_v48 }
 0x190   : > { %539 = vmatprep.subr.mxu1 %v606_v9  ;;  %v369_v50 = vld [vmem:[#allocation2 + $0x10] sm:$0xff] }
 0x193   : > { %540 = vmatpush3.msra.mxu1 %v369_v50 }
 0x194   : > { %542 = vmatmul.mubr.msk.f32.vlgmr.msra.gmra.mrb[4].mxu1 %vm370_vm4, %v366_v51 }
 0x267   : > { %v440_v52 = vpop.f32.mrb[4].mxu1 }
 0x268   : > { %v444_v53 = vmax.f32 %v440_v52, 0.0  ;;  %v543_v54 = vpop.f32.mrb[5].mxu1 }
 0x26a   : > { %445 = vst.msk [vmem:[%s223_s12] sm:$0xff] %vm229_vm2, %v444_v53 }
 0x26b PF: > { %s14_s17 = sadd.s32 1, %s603_s17   ;;  %s701_s15 = smov %s599_s16 }
 0x26c   : > { %p11_p5 = scmp.ge.s32.totalorder %s14_s17, 4   ;;  %s702_s16 = smov %s704_s18 }
 0x26e   :  { %13 = sbr.rel (!%p11_p5) target bundleno = 2 (0x2), region = 74 }

</bundles_post_ra>
